<compile_context>
chip_gen: v5e
topology: v5e:2x2
jax: 0.10.0
libtpu: 0.0.40
codegen_flags: <defaults>
</compile_context>

<pallas_src>
import numpy as np
import jax
import jax.numpy as jnp
from jax.experimental import pallas as pl
from jax.experimental.pallas import tpu as pltpu


# -----------------------------------------------------------------------------
# Projection kernel (hoisted, batch-invariant): out = feat @ W  (bf16 -> f32)
# -----------------------------------------------------------------------------
def _project_kernel(feat_ref, w_ref, out_ref):
    out_ref[...] = jnp.dot(feat_ref[...], w_ref[...],
                           preferred_element_type=jnp.float32)


def project_features(feat, weight, *, tm=512):
    """(n, f_in) @ (f_in, e) -> (n_pad, e) f32 with bf16 MXU operands.

    K is zero-padded to a multiple of 128 (fills the MXU depth; exact), rows
    are padded to a multiple of 8 (or tm) and tiled over a parallel grid so
    large per-ntype feature tables pipeline and shard across TensorCores.
    Returns the row-padded result; callers track padded row counts.
    """
    n, f_in = feat.shape
    e = weight.shape[1]
    k_pad = pl.cdiv(f_in, 128) * 128
    tm = min(tm, pl.cdiv(n, 8) * 8)
    n_pad = pl.cdiv(n, tm) * tm

    feat = feat.astype(jnp.bfloat16)
    weight = weight.astype(jnp.bfloat16)
    if k_pad != f_in:
        feat = jnp.pad(feat, ((0, 0), (0, k_pad - f_in)))
        weight = jnp.pad(weight, ((0, k_pad - f_in), (0, 0)))
    if n_pad != n:
        feat = jnp.pad(feat, ((0, n_pad - n), (0, 0)))

    return pl.pallas_call(
        _project_kernel,
        out_shape=jax.ShapeDtypeStruct((n_pad, e), jnp.float32),
        grid=(n_pad // tm,),
        in_specs=[pl.BlockSpec((tm, k_pad), lambda i: (i, 0)),
                  pl.BlockSpec((k_pad, e), lambda i: (0, 0))],
        out_specs=pl.BlockSpec((tm, e), lambda i: (i, 0)),
        compiler_params=pltpu.CompilerParams(
            dimension_semantics=("parallel",)),
    )(feat, weight)


# -----------------------------------------------------------------------------
# Fused batch gather: true index-driven row gather from two resident tables
# -----------------------------------------------------------------------------
def gather_rows(proj_table, node_embeds, cidx, *, td=512):
    """out[i] = proj_table[cidx[i]]                 if cidx[i] <  proj_rows
              = node_embeds[cidx[i] - proj_rows]    otherwise.

    Combined indices travel via scalar prefetch (SMEM); both tables are
    grid-invariant VMEM-resident blocks (node_embeds is never concatenated or
    copied through HBM per forward).  Each grid step gathers a td-row,
    lane-dense output tile with per-row dynamic VMEM loads.
    """
    n = cidx.shape[0]
    r_proj, e = proj_table.shape
    n_nodes = node_embeds.shape[0]
    td = min(td, pl.cdiv(n, 8) * 8)
    n_pad = pl.cdiv(n, td) * td
    if n_pad != n:
        cidx = jnp.pad(cidx, (0, n_pad - n))   # padded rows gather proj row 0
    cidx = cidx.astype(jnp.int32)

    def kernel(cidx_ref, proj_ref, nemb_ref, out_ref):
        base = pl.program_id(0) * td

        @pl.loop(0, td // 8)
        def _(r8):
            for u in range(8):                 # manual 8x unroll (LLO visibility)
                r = r8 * 8 + u
                row = cidx_ref[base + r]
                # Clamp both paths so out-of-range indices can never fault.
                prow = jnp.minimum(row, r_proj - 1)
                nrow = jnp.clip(row - r_proj, 0, n_nodes - 1)
                pv = proj_ref[pl.ds(prow, 1), :]
                nv = nemb_ref[pl.ds(nrow, 1), :]
                out_ref[pl.ds(r, 1), :] = jnp.where(row < r_proj, pv, nv)

    # Explicit VMEM budget: (possibly double-buffered) resident tables plus the
    # double-buffered (td, e) output tile, with headroom; clamped to v7x's
    # 64 MiB physical VMEM.
    vmem_need = 4 * (2 * proj_table.size + 2 * node_embeds.size + 4 * td * e) \
        + (4 << 20)
    vmem_limit = int(min(max(vmem_need, 32 << 20), 64 << 20))
    # TODO(synk): for production-size node_embeds (table > ~40 MiB on v7x),
    # switch the tables to memory_space=pl.ANY and implement a manual
    # double-buffered per-row DMA gather instead of the VMEM-resident path.

    out = pl.pallas_call(
        kernel,
        out_shape=jax.ShapeDtypeStruct((n_pad, e), jnp.float32),
        grid_spec=pltpu.PrefetchScalarGridSpec(
            num_scalar_prefetch=1,
            grid=(n_pad // td,),
            in_specs=[pl.BlockSpec((r_proj, e), lambda i, c: (0, 0)),
                      pl.BlockSpec((n_nodes, e), lambda i, c: (0, 0))],
            out_specs=pl.BlockSpec((td, e), lambda i, c: (i, 0)),
        ),
        compiler_params=pltpu.CompilerParams(
            dimension_semantics=("parallel",),     # 2-TC sharding on v7x
            vmem_limit_bytes=vmem_limit),
    )(cidx, proj_table, node_embeds)
    return out[:n] if n_pad != n else out


# -----------------------------------------------------------------------------
# Module (parameter container + forward glue)
# -----------------------------------------------------------------------------
class RelGraphEmbedLayerHomo:
    """JAX/Pallas port of panrep's RelGraphEmbedLayerHomo.

    input_sizes: list of length num_of_ntype; an int feature width for node
    types carrying an input feature matrix, or None for learned-embedding types
    (mirrors `input_size[ntype].shape[1]` in the PyTorch constructor).
    dev_id / sparse_emb / idmap are device plumbing with no kernel content.
    """

    def __init__(self, key, num_nodes, num_of_ntype, input_sizes, embed_size,
                 sparse_emb=False, embed_name="embed", gather_tile=512):
        self.num_nodes = num_nodes
        self.num_of_ntype = num_of_ntype
        self.embed_size = embed_size
        self.embed_name = embed_name
        self.sparse_emb = sparse_emb
        self.gather_tile = gather_tile

        keys = jax.random.split(key, num_of_ntype + 1)
        self.embeds = {}
        for t in range(num_of_ntype):
            if input_sizes[t] is not None:
                in_sz = int(input_sizes[t])
                lim = float(np.sqrt(6.0 / (in_sz + embed_size)))  # xavier_uniform_
                self.embeds[t] = jax.random.uniform(
                    keys[t], (in_sz, embed_size), jnp.float32, -lim, lim)
        # nn.Embedding(num_nodes, embed_size); nn.init.uniform_(-1, 1)
        self.node_embeds = jax.random.uniform(
            keys[-1], (num_nodes, embed_size), jnp.float32, -1.0, 1.0)

    # ---------------- Pallas forward ----------------
    def forward(self, node_ids, node_tids, type_ids, features):
        # 1) Hoisted per-ntype projections (batch-invariant), concatenated into
        #    one small table.  node_embeds is NOT concatenated (static table,
        #    passed straight to the gather kernel).
        tables, offsets, off = [], {}, 0
        for t in range(self.num_of_ntype):
            if features[t] is not None:
                proj = project_features(features[t].astype(jnp.float32),
                                        self.embeds[t])
                offsets[t] = off
                tables.append(proj)
                off += proj.shape[0]          # padded row count (multiple of 8)
        if tables:
            proj_table = tables[0] if len(tables) == 1 else jnp.concatenate(tables, 0)
        else:
            proj_table = jnp.zeros((8, self.embed_size), jnp.float32)
        r_proj = proj_table.shape[0]

        # 2) Combined per-row index: feature ntypes -> projected-table rows,
        #    featureless ntypes -> r_proj + node id (cheap int plumbing).
        cidx = r_proj + node_ids.astype(jnp.int32)
        for t, o in offsets.items():
            cidx = jnp.where(node_tids == t, o + type_ids.astype(jnp.int32), cidx)

        # 3) Single fused gather over the batch (restores batch order).
        return gather_rows(proj_table, self.node_embeds, cidx,
                           td=self.gather_tile)

    # -------- Pure-JAX reference mirroring the literal PyTorch loop --------
    def forward_ref(self, node_ids, node_tids, type_ids, features):
        node_ids_np = np.asarray(node_ids)
        node_tids_np = np.asarray(node_tids)
        type_ids_np = np.asarray(type_ids)
        n = node_ids_np.shape[0]
        idx = np.empty(n, dtype=np.int64)
        embeds, num = [], 0
        for t in range(self.num_of_ntype):
            loc = node_tids_np == t
            if features[t] is not None:
                rows = jnp.asarray(np.asarray(features[t])[type_ids_np[loc]])
                emb = rows @ self.embeds[t]
            else:
                emb = self.node_embeds[jnp.asarray(node_ids_np[loc])]
            embeds.append(emb)
            idx[loc] = np.arange(emb.shape[0]) + num
            num += emb.shape[0]
        embeds = jnp.concatenate(embeds, axis=0)
        return embeds[jnp.asarray(idx)]


# -----------------------------------------------------------------------------
# Demo
# -----------------------------------------------------------------------------
if __name__ == "__main__":
    key = jax.random.PRNGKey(0)
    embed_size = 128            # lane-dense output width (multiple of 128)
    num_nodes = 64              # rows of the learned node-embedding table
    num_of_ntype = 3
    feat_rows = {0: 40, 2: 24}  # ntypes 0 and 2 carry feature matrices; 1 does not
    feat_dims = {0: 48, 2: 16}
    input_sizes = [feat_dims.get(t) for t in range(num_of_ntype)]
    batch = 1024                # -> 2 parallel gather tiles @ td=512

    k_mod, k_f0, k_f2, k_tid, k_nid, k_ty = jax.random.split(key, 6)
    layer = RelGraphEmbedLayerHomo(k_mod, num_nodes, num_of_ntype,
                                   input_sizes, embed_size)

    features = [None] * num_of_ntype
    features[0] = jax.random.normal(k_f0, (feat_rows[0], feat_dims[0]), jnp.float32)
    features[2] = jax.random.normal(k_f2, (feat_rows[2], feat_dims[2]), jnp.float32)

    node_tids = jax.random.randint(k_tid, (batch,), 0, num_of_ntype, jnp.int32)
    node_ids = jax.random.randint(k_nid, (batch,), 0, num_nodes, jnp.int32)
    # Per-row index into that ntype's feature table (only consumed for feat ntypes).
    rows_per_type = jnp.array([feat_rows.get(t, 1) for t in range(num_of_ntype)],
                              jnp.int32)
    u = jax.random.uniform(k_ty, (batch,))
    type_ids = (u * rows_per_type[node_tids]).astype(jnp.int32)

    out = layer.forward(node_ids, node_tids, type_ids, features)
    out = jax.block_until_ready(out)

    ref = layer.forward_ref(node_ids, node_tids, type_ids, features)
    assert out.shape == (batch, embed_size)
    out_np, ref_np = np.asarray(out), np.asarray(ref)
    # Projected rows use bf16 MXU operands with f32 accumulation -> documented
    # looser tolerance vs the f32 PyTorch-style reference.
    assert np.allclose(out_np, ref_np, rtol=5e-2, atol=5e-2)
    # Featureless (node-embedding) rows are exact f32 copies.
    featless_types = [t for t in range(num_of_ntype) if features[t] is None]
    featless = np.isin(np.asarray(node_tids), featless_types)
    assert np.allclose(out_np[featless], ref_np[featless], rtol=1e-6, atol=1e-6)

    print("KERNEL_OK")
</pallas_src>

<mosaic_0001>
module attributes {stable_mosaic.version = 11 : i64} {
  func.func @_project_kernel(%arg0: i32, %arg1: memref<40x128xbf16, #tpu.memory_space<vmem>>, %arg2: memref<128x128xbf16, #tpu.memory_space<vmem>>, %arg3: memref<40x128xf32, #tpu.memory_space<vmem>>) attributes {dimension_semantics = [#tpu.dimension_semantics<parallel>], iteration_bounds = array<i64: 1>, scalar_prefetch = 0 : i64, scratch_operands = 0 : i64, tpu.core_type = #tpu.core_type<tc>, window_params = [{transform_indices = @transform_0, window_bounds = array<i64: 40, 128>}, {pipeline_mode = #tpu.pipeline_mode<synchronous>, transform_indices = @transform_1, window_bounds = array<i64: 128, 128>}, {transform_indices = @transform_2, window_bounds = array<i64: 40, 128>}]} {
    %c0 = arith.constant 0 : index
    %c0_0 = arith.constant 0 : index
    %0 = vector.load %arg1[%c0, %c0_0] : memref<40x128xbf16, #tpu.memory_space<vmem>>, vector<40x128xbf16>
    %c0_1 = arith.constant 0 : index
    %c0_2 = arith.constant 0 : index
    %1 = vector.load %arg2[%c0_1, %c0_2] : memref<128x128xbf16, #tpu.memory_space<vmem>>, vector<128x128xbf16>
    %cst = arith.constant dense<0.000000e+00> : vector<40x128xf32>
    %2 = tpu.matmul %0, %1, %cst {dimension_numbers = #tpu.dot_dimension_numbers<[1], [0], [0], [1], [0, 0, 1, 1], [], []>} : vector<40x128xbf16>, vector<128x128xbf16>, vector<40x128xf32> -> vector<40x128xf32>
    %c0_3 = arith.constant 0 : index
    %c0_4 = arith.constant 0 : index
    %3 = vector.load %arg3[%c0_3, %c0_4] : memref<40x128xf32, #tpu.memory_space<vmem>>, vector<40x128xf32>
    tpu.vector_store %arg3[%c0_3, %c0_4], %2 {strides = array<i32>} : memref<40x128xf32, #tpu.memory_space<vmem>>, vector<40x128xf32>,
    return
  }
  func.func @transform_0(%arg0: i32) -> (i32, i32) {
    %c0_i32 = arith.constant 0 : i32
    %c0_i32_0 = arith.constant 0 : i32
    return %arg0, %c0_i32 : i32, i32
  }
  func.func @transform_1(%arg0: i32) -> (i32, i32) {
    %c0_i32 = arith.constant 0 : i32
    %c0_i32_0 = arith.constant 0 : i32
    %c0_i32_1 = arith.constant 0 : i32
    return %c0_i32, %c0_i32_0 : i32, i32
  }
  func.func @transform_2(%arg0: i32) -> (i32, i32) {
    %c0_i32 = arith.constant 0 : i32
    %c0_i32_0 = arith.constant 0 : i32
    return %arg0, %c0_i32 : i32, i32
  }
}

</mosaic_0001>

<bundles_post_ra>
// kernel: tpu_custom_call.1
= control target key start
LH: loop header
LB: loop body
LE: loop exit
PB: predicated region body
PF: predicated region fallthrough
CT: control target
= control target key end

     0   :  { %7 = vsyncpa [#allocation3], 0  ;;  %s359_s0 = inlined_call_operand.hbm [shape: bf16[40,128], index: 0, kind: input, shape index: {}]   ;;  %s360_s1 = inlined_call_operand.hbm [shape: bf16[128,128], index: 1, kind: input, shape index: {}]   ;;  %s361_s2 = inlined_call_operand.hbm [shape: f32[40,128], index: 2, kind: output, shape index: {}]  }
   0x1   :  { %8 = vsyncpa [#allocation6], 0 }
   0x2   :  { %9 = vsyncpa [#allocation4], 0  ;;  %s14_s11 = sshll.u32 %s359_s0, 4  ;;  %s328_s12 = smov [#allocation2]   ;;  %s15_s11 = int_to_ptr.hbm [resolvable:$true] %s14_s11 }
   0x3   :  { %s16_s13 = sshll.u32 %s328_s12, 4  ;;  %s27_s16 = sshll.u32 %s360_s1, 4  ;;  %s17_s13 = int_to_ptr.vmem [resolvable:$true] %s16_s13  ;;  %s28_s16 = int_to_ptr.hbm [resolvable:$true] %s27_s16 }
   0x4   :  { %s329_s17 = smov 64   ;;  %s330_s18 = smov 4  }
   0x5   :  { %22 = dma.hbm_to_vmem [thread:$0]  %s15_s11, 320, %s17_s13, [#allocation3], %s329_s17, %s329_s17, %s330_s18  }
   0x6   :  { %s331_s19 = smov [#allocation5]  }
   0x7   :  { %s29_s20 = sshll.u32 %s331_s19, 4  ;;  %s30_s20 = int_to_ptr.vmem [resolvable:$true] %s29_s20 }
   0x8   :  { %35 = dma.hbm_to_vmem [thread:$0]  %s28_s16, 1024, %s30_s20, [#allocation6], %s329_s17, %s329_s17, %s330_s18  }
   0x9   :  { %322 = dma.done.wait [#allocation3], 320  }
   0xa   :  { %323 = vsyncadd [#allocation3], 4294966976 }
   0xb   :  { %324 = dma.done.wait [#allocation6], 1024  }
   0xc   :  { %325 = vsyncadd [#allocation6], 4294966272  ;;  %v226_v0 = vld [vmem:[#allocation5 + $0x38] sm:$0xff]  ;;  %v225_v1 = vld [vmem:[#allocation5 + $0x30] sm:$0xff]  ;;  %s332_s0 = smov [#allocation7]   ;;  %s163_s23 = sshll.u32 %s361_s2, 4  ;;  %s164_s23 = int_to_ptr.hbm [resolvable:$true] %s163_s23 }
   0xd   :  { %129 = vmatpush.bf16.msra.mxu0 %v226_v0  ;;  %227 = vmatpush.bf16.msra.mxu1 %v226_v0  ;;  %v224_v2 = vld [vmem:[#allocation5 + $0x28] sm:$0xff]  ;;  %v223_v3 = vld [vmem:[#allocation5 + $0x20] sm:$0xff]  ;;  %v222_v4 = vld [vmem:[#allocation5 + $0x18] sm:$0xff]  ;;  %s161_s1 = sshll.u32 %s332_s0, 4  ;;  %s333_s24 = smov 128   ;;  %s162_s1 = int_to_ptr.vmem [resolvable:$true] %s161_s1 }
   0xe   :  { %228 = vmatpush.bf16.msra.mxu2 %v226_v0  ;;  %v221_v5 = vld [vmem:[#allocation5 + $0x10] sm:$0xff]  ;;  %v220_v6 = vld [vmem:[#allocation5 + $0x8] sm:$0xff]  ;;  %v48_v7 = vld [vmem:[#allocation2 + $0x10] sm:$0xf]  ;;  %s334_s25 = smov 8  }
   0xf   :  { %v219_v8 = vld [vmem:[#allocation5] sm:$0xff]  ;;  %v74_v9 = vunpack.c.l.b16 %v48_v7  ;;  %v217_v10 = vld [vmem:[#allocation2] sm:$0xff]  ;;  %v218_v11 = vld [vmem:[#allocation2 + $0x8] sm:$0xff] }
  0x11   :  { %130 = vmatpush.bf16.msra.mxu0 %v225_v1  ;;  %229 = vmatpush.bf16.msra.mxu1 %v225_v1  ;;  %v77_v12 = vpack.c.b16 %v74_v9, %v74_v9 }
  0x12   :  { %230 = vmatpush.bf16.msra.mxu2 %v225_v1 }
  0x15   :  { %131 = vmatpush.bf16.msra.mxu0 %v224_v2  ;;  %231 = vmatpush.bf16.msra.mxu1 %v224_v2 }
  0x16   :  { %232 = vmatpush.bf16.msra.mxu2 %v224_v2 }
  0x19   :  { %132 = vmatpush.bf16.msra.mxu0 %v223_v3  ;;  %233 = vmatpush.bf16.msra.mxu1 %v223_v3 }
  0x1a   :  { %234 = vmatpush.bf16.msra.mxu2 %v223_v3 }
  0x1d   :  { %133 = vmatpush.bf16.msra.mxu0 %v222_v4  ;;  %235 = vmatpush.bf16.msra.mxu1 %v222_v4 }
  0x1e   :  { %236 = vmatpush.bf16.msra.mxu2 %v222_v4 }
  0x21   :  { %134 = vmatpush.bf16.msra.mxu0 %v221_v5  ;;  %237 = vmatpush.bf16.msra.mxu1 %v221_v5 }
  0x22   :  { %238 = vmatpush.bf16.msra.mxu2 %v221_v5 }
  0x25   :  { %135 = vmatpush.bf16.msra.mxu0 %v220_v6  ;;  %239 = vmatpush.bf16.msra.mxu1 %v220_v6 }
  0x26   :  { %240 = vmatpush.bf16.msra.mxu2 %v220_v6 }
  0x29   :  { %136 = vmatpush.bf16.msra.mxu0 %v219_v8  ;;  %241 = vmatpush.bf16.msra.mxu1 %v219_v8 }
  0x2a   :  { %242 = vmatpush.bf16.msra.mxu2 %v219_v8 }
  0x2c   :  { %137 = vmatmul.bf16.vlgmr.msra.gmra.mxu0 %v217_v10  ;;  %142 = vmatmul.bf16.vlgmr.msra.gmra.mxu1 %v218_v11 }
  0x2d   :  { %147 = vmatmul.bf16.vlgmr.msra.gmra.mxu2 %v77_v12 }
  0xa9   :  { %v138_v13 = vpop.f32.mrf.mxu0  ;;  %v143_v14 = vpop.f32.mrf.mxu1 }
  0xaa   :  { %152 = vst [vmem:[#allocation7] sm:$0xff] %v138_v13 }
  0xab   :  { %154 = vst [vmem:[#allocation7 + $0x10] sm:$0xff] %v143_v14 }
  0xb0   :  { %v148_v15 = vpop.f32.mrf.mxu2 }
  0xb1   :  { %156 = vst [vmem:[#allocation7 + $0x20] sm:$0xff] %v148_v15  ;;  %v140_v16 = vpop.f32.mrf.mxu0  ;;  %v145_v17 = vpop.f32.mrf.mxu1 }
  0xb2   :  { %153 = vst [vmem:[#allocation7 + $0x8] sm:$0xff] %v140_v16 }
  0xb3   :  { %155 = vst [vmem:[#allocation7 + $0x18] sm:$0xff] %v145_v17 }
  0xb4   :  { %169 = dma.vmem_to_hbm [thread:$0]  %s162_s1, 640, %s164_s23, [#allocation4], %s333_s24, %s333_s24, %s334_s25  }
  0xb8   :  { %v150_v18 = vpop.f32.mrf.mxu2 }
  0xb9   :  { %326 = dma.done.wait [#allocation4], 640  }
  0xba   :  { %327 = vsyncadd [#allocation4], 4294966656 }
  0xbb   :  { %174 = vsyncpa [#allocation3], 1 }
  0xbc   :  { %175 = vsyncpa [#allocation6], 1 }
  0xbd   :  { %176 = vsyncpa [#allocation4], 1 }

</bundles_post_ra>
